<compile_context>
chip_gen: v7x
topology: tpu7x:2x2x1
jax: 0.10.0
libtpu: 0.0.40
codegen_flags: <defaults>
</compile_context>

<pallas_src>
import functools

import jax
import jax.numpy as jnp
from jax.experimental import pallas as pl
from jax.experimental.pallas import tpu as pltpu


def _round_up(x, m):
    return ((x + m - 1) // m) * m


def _pick_tiling(B, D, block_rows=None):
    """Choose the batch tile TB and the padded batch size B_pad."""
    B8 = _round_up(B, 8)                      # sublane multiple
    if block_rows is None:
        # Budget ~16 MiB for the two double-buffered (TB, D) f32 inputs:
        #   2 inputs * 2 buffers * TB * D * 4 bytes  <=  16 MiB
        budget = 16 * 1024 * 1024
        tb = budget // (16 * max(D, 1))
        tb = max(128, min(2048, (tb // 128) * 128))
    else:
        tb = max(128, _round_up(int(block_rows), 128))
    if B8 <= tb:
        return B8, B8                         # single tile: block == full array
    return tb, _round_up(B8, tb)


def _contrastive_kernel(o1_ref, o2_ref, tgt_ref, dist_ref, loss_ref, *,
                        margin, eps):
    # (TB, D) f32 tiles of the two embeddings.
    diff = o2_ref[...] - o1_ref[...]
    sq = diff * diff

    # Row reduction as ones(1, D) @ sq^T on the MXU: the (1, TB) result is
    # lane-dense, so the epilogue and the stores below use full vregs / vst's.
    d = o1_ref.shape[1]
    ones_row = jnp.ones((1, d), jnp.float32)
    dist_row = jax.lax.dot_general(
        ones_row, sq,
        dimension_numbers=(((1,), (1,)), ((), ())),
        precision=jax.lax.Precision.HIGHEST,
        preferred_element_type=jnp.float32,
    )                                                       # (1, TB)
    dist_ref[...] = dist_row

    # Hinge / weighted-combine epilogue, all lane-dense (EUP sqrt rides free).
    t = tgt_ref[...]                                        # (1, TB)
    hinge = jnp.maximum(margin - jnp.sqrt(dist_row + eps), 0.0)
    loss_ref[...] = 0.5 * (t * dist_row + (1.0 - t) * hinge * hinge)


def contrastive_loss(output1, output2, target, *, margin, eps=1e-9,
                     size_average=True, block_rows=None):
    """JAX/Pallas equivalent of ContrastiveLoss.forward.

    output1, output2: (B, D) float arrays.
    target:           (B,)   {0,1} labels (any numeric dtype).
    Returns (loss_scalar, distances) with distances of shape (B,).
    """
    output1 = jnp.asarray(output1, jnp.float32)
    output2 = jnp.asarray(output2, jnp.float32)
    B, D = output1.shape
    target_f = jnp.asarray(target, jnp.float32).reshape(B)

    TB, B_pad = _pick_tiling(B, D, block_rows)
    pad = B_pad - B
    if pad:
        output1 = jnp.pad(output1, ((0, pad), (0, 0)))
        output2 = jnp.pad(output2, ((0, pad), (0, 0)))
        # Pad target with 1.0: pad rows have distance 0 -> loss contribution 0.
        target_f = jnp.pad(target_f, (0, pad), constant_values=1.0)
    target_row = target_f.reshape(1, B_pad)

    nb = B_pad // TB
    kernel = functools.partial(_contrastive_kernel,
                               margin=float(margin), eps=float(eps))

    cost = pl.CostEstimate(
        flops=3 * B_pad * D + 8 * B_pad,
        transcendentals=B_pad,
        bytes_accessed=2 * B_pad * D * 4 + 3 * B_pad * 4,
    )

    dist_row, loss_row = pl.pallas_call(
        kernel,
        grid=(nb,),
        in_specs=[
            pl.BlockSpec((TB, D), lambda i: (i, 0)),     # output1 tile
            pl.BlockSpec((TB, D), lambda i: (i, 0)),     # output2 tile
            pl.BlockSpec((1, TB), lambda i: (0, i)),     # target (lane-dense)
        ],
        out_specs=(
            pl.BlockSpec((1, TB), lambda i: (0, i)),     # distances (lane-dense)
            pl.BlockSpec((1, TB), lambda i: (0, i)),     # per-row losses
        ),
        out_shape=(
            jax.ShapeDtypeStruct((1, B_pad), jnp.float32),
            jax.ShapeDtypeStruct((1, B_pad), jnp.float32),
        ),
        compiler_params=pltpu.CompilerParams(
            dimension_semantics=("parallel",),           # no carried state
            vmem_limit_bytes=32 * 1024 * 1024,           # > v5e's 16 MiB default
        ),
        cost_estimate=cost,
    )(output1, output2, target_row)

    distances = dist_row[0, :B]
    losses = loss_row[0, :B]
    loss = jnp.mean(losses) if size_average else jnp.sum(losses)
    return loss, distances


def _reference(output1, output2, target, margin, eps=1e-9, size_average=True):
    # Pure-JAX reference mirroring the PyTorch code.
    distances = jnp.sum((output2 - output1) ** 2, axis=1)
    t = target.astype(jnp.float32)
    hinge = jnp.maximum(margin - jnp.sqrt(distances + eps), 0.0)
    losses = 0.5 * (t * distances + (1.0 - t) * hinge ** 2)
    loss = jnp.mean(losses) if size_average else jnp.sum(losses)
    return loss, distances


if __name__ == "__main__":
    margin = 1.0

    # --- Small single-tile smoke test (shapes implied by the module) ---------
    key = jax.random.PRNGKey(0)
    k1, k2, k3 = jax.random.split(key, 3)
    B, D = 8, 32
    o1 = jax.random.normal(k1, (B, D), dtype=jnp.float32)
    o2 = jax.random.normal(k2, (B, D), dtype=jnp.float32)
    tgt = jax.random.bernoulli(k3, 0.5, (B,)).astype(jnp.int32)

    loss, dist = contrastive_loss(o1, o2, tgt, margin=margin)
    jax.block_until_ready((loss, dist))
    ref_loss, ref_dist = _reference(o1, o2, tgt, margin)
    assert jnp.allclose(loss, ref_loss, rtol=1e-5, atol=1e-6), (loss, ref_loss)
    assert jnp.allclose(dist, ref_dist, rtol=1e-5, atol=1e-5)

    # --- Multi-tile + batch-padding path (forced small block, size_average=False)
    k4, k5, k6 = jax.random.split(jax.random.PRNGKey(1), 3)
    B2, D2 = 300, 32
    o1b = jax.random.normal(k4, (B2, D2), dtype=jnp.float32)
    o2b = jax.random.normal(k5, (B2, D2), dtype=jnp.float32)
    tgtb = jax.random.bernoulli(k6, 0.5, (B2,)).astype(jnp.int32)

    loss2, dist2 = contrastive_loss(o1b, o2b, tgtb, margin=margin,
                                    size_average=False, block_rows=128)
    jax.block_until_ready((loss2, dist2))
    ref_loss2, ref_dist2 = _reference(o1b, o2b, tgtb, margin, size_average=False)
    assert jnp.allclose(loss2, ref_loss2, rtol=1e-5, atol=1e-5), (loss2, ref_loss2)
    assert jnp.allclose(dist2, ref_dist2, rtol=1e-5, atol=1e-5)

    print("KERNEL_OK")
</pallas_src>

<mosaic_0001>
module attributes {stable_mosaic.version = 11 : i64} {
  func.func @_contrastive_kernel(%arg0: i32, %arg1: memref<8x32xf32, #tpu.memory_space<vmem>>, %arg2: memref<8x32xf32, #tpu.memory_space<vmem>>, %arg3: memref<1x8xf32, #tpu.memory_space<vmem>>, %arg4: memref<1x8xf32, #tpu.memory_space<vmem>>, %arg5: memref<1x8xf32, #tpu.memory_space<vmem>>) attributes {dimension_semantics = [#tpu.dimension_semantics<parallel>], iteration_bounds = array<i64: 1>, scalar_prefetch = 0 : i64, scratch_operands = 0 : i64, tpu.core_type = #tpu.core_type<tc>, window_params = [{transform_indices = @transform_0, window_bounds = array<i64: 8, 32>}, {transform_indices = @transform_1, window_bounds = array<i64: 8, 32>}, {transform_indices = @transform_2, window_bounds = array<i64: 1, 8>}, {transform_indices = @transform_3, window_bounds = array<i64: 1, 8>}, {transform_indices = @transform_4, window_bounds = array<i64: 1, 8>}]} {
    %c0 = arith.constant 0 : index
    %c0_0 = arith.constant 0 : index
    %0 = vector.load %arg2[%c0, %c0_0] : memref<8x32xf32, #tpu.memory_space<vmem>>, vector<8x32xf32>
    %c0_1 = arith.constant 0 : index
    %c0_2 = arith.constant 0 : index
    %1 = vector.load %arg1[%c0_1, %c0_2] : memref<8x32xf32, #tpu.memory_space<vmem>>, vector<8x32xf32>
    %2 = arith.subf %0, %1 : vector<8x32xf32>
    %3 = arith.mulf %2, %2 : vector<8x32xf32>
    %cst = arith.constant 1.000000e+00 : f32
    %4 = vector.broadcast %cst : f32 to vector<1x32xf32>
    %cst_3 = arith.constant dense<0.000000e+00> : vector<1x8xf32>
    %5 = tpu.matmul %4, %3, %cst_3 {dimension_numbers = #tpu.dot_dimension_numbers<[1], [1], [0], [0], [0, 0, 1, 0], [], []>, precision = #tpu.contract_precision<fp32>} : vector<1x32xf32>, vector<8x32xf32>, vector<1x8xf32> -> vector<1x8xf32>
    %c0_4 = arith.constant 0 : index
    %c0_5 = arith.constant 0 : index
    %6 = vector.load %arg4[%c0_4, %c0_5] : memref<1x8xf32, #tpu.memory_space<vmem>>, vector<1x8xf32>
    tpu.vector_store %arg4[%c0_4, %c0_5], %5 {strides = array<i32>} : memref<1x8xf32, #tpu.memory_space<vmem>>, vector<1x8xf32>,
    %c0_6 = arith.constant 0 : index
    %c0_7 = arith.constant 0 : index
    %7 = vector.load %arg3[%c0_6, %c0_7] : memref<1x8xf32, #tpu.memory_space<vmem>>, vector<1x8xf32>
    %cst_8 = arith.constant 9.99999971E-10 : f32
    %8 = vector.broadcast %cst_8 : f32 to vector<1x8xf32>
    %9 = arith.addf %5, %8 : vector<1x8xf32>
    %10 = math.sqrt %9 : vector<1x8xf32>
    %cst_9 = arith.constant 1.000000e+00 : f32
    %11 = vector.broadcast %cst_9 : f32 to vector<1x8xf32>
    %12 = arith.subf %11, %10 : vector<1x8xf32>
    %cst_10 = arith.constant 0.000000e+00 : f32
    %13 = vector.broadcast %cst_10 : f32 to vector<1x8xf32>
    %14 = arith.maximumf %12, %13 : vector<1x8xf32>
    %15 = arith.mulf %7, %5 : vector<1x8xf32>
    %cst_11 = arith.constant 1.000000e+00 : f32
    %16 = vector.broadcast %cst_11 : f32 to vector<1x8xf32>
    %17 = arith.subf %16, %7 : vector<1x8xf32>
    %18 = arith.mulf %17, %14 : vector<1x8xf32>
    %19 = arith.mulf %18, %14 : vector<1x8xf32>
    %20 = arith.addf %15, %19 : vector<1x8xf32>
    %cst_12 = arith.constant 5.000000e-01 : f32
    %21 = vector.broadcast %cst_12 : f32 to vector<1x8xf32>
    %22 = arith.mulf %21, %20 : vector<1x8xf32>
    %c0_13 = arith.constant 0 : index
    %c0_14 = arith.constant 0 : index
    %23 = vector.load %arg5[%c0_13, %c0_14] : memref<1x8xf32, #tpu.memory_space<vmem>>, vector<1x8xf32>
    tpu.vector_store %arg5[%c0_13, %c0_14], %22 {strides = array<i32>} : memref<1x8xf32, #tpu.memory_space<vmem>>, vector<1x8xf32>,
    return
  }
  func.func @transform_0(%arg0: i32) -> (i32, i32) {
    %c0_i32 = arith.constant 0 : i32
    %c0_i32_0 = arith.constant 0 : i32
    return %arg0, %c0_i32 : i32, i32
  }
  func.func @transform_1(%arg0: i32) -> (i32, i32) {
    %c0_i32 = arith.constant 0 : i32
    %c0_i32_0 = arith.constant 0 : i32
    return %arg0, %c0_i32 : i32, i32
  }
  func.func @transform_2(%arg0: i32) -> (i32, i32) {
    %c0_i32 = arith.constant 0 : i32
    %c0_i32_0 = arith.constant 0 : i32
    return %c0_i32, %arg0 : i32, i32
  }
  func.func @transform_3(%arg0: i32) -> (i32, i32) {
    %c0_i32 = arith.constant 0 : i32
    %c0_i32_0 = arith.constant 0 : i32
    return %c0_i32, %arg0 : i32, i32
  }
  func.func @transform_4(%arg0: i32) -> (i32, i32) {
    %c0_i32 = arith.constant 0 : i32
    %c0_i32_0 = arith.constant 0 : i32
    return %c0_i32, %arg0 : i32, i32
  }
}

</mosaic_0001>

<bundles_post_ra>
// kernel: tpu_custom_call.1
= control target key start
LH: loop header
LB: loop body
LE: loop exit
PB: predicated region body
PF: predicated region fallthrough
CT: control target
= control target key end

     0   :  { %10 = vsyncpa [#allocation3], 0  ;;  %s806_s0 = inlined_call_operand.hbm [shape: f32[8,32], index: 0, kind: input, shape index: {}]   ;;  %s807_s1 = inlined_call_operand.hbm [shape: f32[8,32], index: 1, kind: input, shape index: {}]   ;;  %s808_s2 = inlined_call_operand.vmem [shape: f32[1,8], index: 2, kind: input, shape index: {}]   ;;  %s809_s3 = inlined_call_operand.hbm [shape: f32[1,8], index: 3, kind: output, shape index: {0}]   ;;  %s810_s4 = inlined_call_operand.hbm [shape: f32[1,8], index: 4, kind: output, shape index: {1}]  }
   0x1   :  { %11 = vsyncpa [#allocation6], 0 }
   0x2   :  { %12 = vsyncpa [#allocation4], 0 }
   0x3   :  { %13 = vsyncpa [#allocation9], 0  ;;  %s709_s15 = smov [#allocation2]   ;;  %s710_s17 = smov [#allocation5]  }
   0x4   :  { %s20_s16 = sshll.u32 %s709_s15, 4  ;;  %s30_s18 = sshll.u32 %s710_s17, 4  ;;  %s21_s16 = int_to_ptr.vmem [resolvable:$true] %s20_s16  ;;  %s31_s18 = int_to_ptr.vmem [resolvable:$true] %s30_s18 }
   0x5   :  { %s613_s21 = scalar_lea.hbm %s806_s0, 128 }
   0x6   :  { %p614_p0 = scmp.ne.s32.totalorder %s806_s0, %s613_s21  ;;  %p617_p1 = scmp.lt.u32.totalorder %s613_s21, %s806_s0 }
   0x8   :  { %p619_p2 = pnand %p617_p1, %p614_p0 }
   0xa   :  { %622 = shalt.err (!%p619_p2)
}
   0xb   :  { %s623_s26 = scalar_lea.vmem %s21_s16, 128  ;;  %p628_p4 = scmp.lt.s32.totalorder %s21_s16, %s21_s16 }
   0xc   :  { %p624_p3 = scmp.ne.s32.totalorder %s21_s16, %s623_s26  ;;  %p629_p5 = scmp.lt.s32.totalorder %s623_s26, %s623_s26 }
   0xe   :  { %p630_p6 = por %p629_p5, %p628_p4 }
  0x10   :  { %p631_p7 = pnand %p630_p6, %p624_p3 }
  0x12   :  { %634 = shalt.err (!%p631_p7)
}
  0x13   :  { %23 = dma.hbm_to_vmem [thread:$0]  %s806_s0, 128, %s21_s16, [#allocation3]  }
  0x14   :  { %s635_s5 = scalar_lea.hbm %s807_s1, 128 }
  0x15   :  { %p636_p8 = scmp.ne.s32.totalorder %s807_s1, %s635_s5  ;;  %p639_p9 = scmp.lt.u32.totalorder %s635_s5, %s807_s1 }
  0x17   :  { %p641_p10 = pnand %p639_p9, %p636_p8 }
  0x19   :  { %644 = shalt.err (!%p641_p10)
}
  0x1a   :  { %s645_s10 = scalar_lea.vmem %s31_s18, 128  ;;  %p650_p12 = scmp.lt.s32.totalorder %s31_s18, %s31_s18 }
  0x1b   :  { %p646_p11 = scmp.ne.s32.totalorder %s31_s18, %s645_s10  ;;  %p651_p13 = scmp.lt.s32.totalorder %s645_s10, %s645_s10 }
  0x1d   :  { %p652_p0 = por %p651_p13, %p650_p12 }
  0x1f   :  { %p653_p1 = pnand %p652_p0, %p646_p11 }
  0x21   :  { %656 = shalt.err (!%p653_p1)
}
  0x22   :  { %33 = dma.hbm_to_vmem [thread:$0]  %s807_s1, 128, %s31_s18, [#allocation6]  }
  0x23   :  { %701 = dma.done.wait [#allocation3], 128  }
  0x24   :  { %702 = vsyncadd [#allocation3], 4294967168 }
  0x25   :  { %703 = dma.done.wait [#allocation6], 128  }
  0x26   :  { %704 = vsyncadd [#allocation6], 4294967168  ;;  %vm46_vm0 = vcmask 261120   ;;  %v711_v0 = vmov 0.0   ;;  %v712_v1 = vmov 0   ;;  %vm713_vm1 = vmmov 0  }
  0x27   :  { %564 = vmatprep.subr.mxu1 %v711_v0  ;;  %579 = vmatprep.subr.mxu0 %v711_v0  ;;  %v48_v2 = vsel %vm46_vm0, 1.0, %v712_v1  ;;  %v42_v5 = vld [vmem:[#allocation5] sm:$0xff]  ;;  %v43_v6 = vld [vmem:[#allocation2] sm:$0xff]  ;;  %v714_v17 = vmov 1.0   ;;  %s715_s1 = smov [#allocation7]   ;;  %vm499_vm2 = vcmask 57344  }
  0x28   :  { %566 = vmatprep.mubr.msk.f32.mxu1 %vm713_vm1, %v711_v0  ;;  %581 = vmatprep.mubr.msk.f32.mxu0 %vm713_vm1, %v711_v0  ;;  %v120_v3 = vsub.f32 %v48_v2, %v48_v2  ;;  %v44_v7 = vsub.f32 %v42_v5, %v43_v6  ;;  %s525_s12 = sshll.u32 %s715_s1, 4  ;;  %s526_s12 = int_to_ptr.vmem [resolvable:$true] %s525_s12 }
  0x29   :  { %s657_s13 = scalar_lea.vmem %s526_s12, 16  ;;  %s661_s14 = scalar_lea.vmem %s526_s12, 32 }
  0x2a   :  { %v121_v4 = vand.u32 4294901760, %v120_v3  ;;  %v45_v8 = vmul.f32 %v44_v7, %v44_v7  ;;  %p658_p2 = scmp.ne.s32.totalorder %s526_s12, %s657_s13  ;;  %p662_p3 = scmp.lt.s32.totalorder %s526_s12, %s526_s12 }
  0x2b   :  { %p663_p4 = scmp.lt.s32.totalorder %s661_s14, %s657_s13 }
  0x2c   :  { %v122_v9 = vsub.f32 %v120_v3, %v121_v4  ;;  %v51_v10 = vsel %vm46_vm0, %v45_v8, 0 }
  0x2d   :  { %v54_v11 = vand.u32 4294901760, %v51_v10  ;;  %p664_p5 = por %p663_p4, %p662_p3 }
  0x2e   :  { %v123_v12 = vand.u32 4294901760, %v122_v9 }
  0x2f   :  { %565 = vmatpush3.xpose.msra.mxu1 %v54_v11  ;;  %v131_v13 = vsub.f32 %v51_v10, %v54_v11  ;;  %580 = vmatpush3.xpose.msra.mxu0 %v54_v11  ;;  %p665_p6 = pnand %p664_p5, %p658_p2 }
  0x30   :  { %569 = vmatprep.subr.mxu1 %v711_v0  ;;  %584 = vmatprep.subr.mxu0 %v711_v0 }
  0x31   :  { %v132_v14 = vand.u32 4294901760, %v131_v13 }
  0x32   :  { %567 = vmatmul.mubr.f32.vlgmr.msra.gmra.mrb[0].mxu1 %v123_v12  ;;  %582 = vmatmul.mubr.f32.vlgmr.msra.gmra.mrb[0].mxu0 %v121_v4 }
  0x33   :  { %v133_v15 = vsub.f32 %v131_v13, %v132_v14  ;;  %585 = vmatpush3.xpose.msra.mxu0 %v132_v14  ;;  %571 = vmatprep.mubr.msk.f32.mxu1 %vm713_vm1, %v711_v0 }
  0x34   :  { %586 = vmatprep.mubr.msk.f32.mxu0 %vm713_vm1, %v711_v0  ;;  %589 = vmatprep.subr.mxu0 %v711_v0 }
  0x35   :  { %v134_v16 = vand.u32 4294901760, %v133_v15 }
  0x37   :  { %570 = vmatpush3.xpose.msra.mxu1 %v134_v16 }
  0x38   :  { %574 = vmatprep.subr.mxu1 %v711_v0 }
  0x3a   :  { %572 = vmatmul.mubr.msk.f32.vlgmr.msra.gmra.mrb[0].mxu1 %vm46_vm0, %v714_v17  ;;  %587 = vmatmul.mubr.msk.f32.vlgmr.msra.gmra.mrb[0].mxu0 %vm46_vm0, %v714_v17 }
  0x3b   :  { %575 = vmatpush3.xpose.msra.mxu1 %v131_v13  ;;  %590 = vmatpush3.xpose.msra.mxu0 %v54_v11 }
  0x3c   :  { %576 = vmatprep.mubr.msk.f32.mxu1 %vm713_vm1, %v711_v0  ;;  %591 = vmatprep.mubr.msk.f32.mxu0 %vm713_vm1, %v711_v0 }
  0x42   :  { %577 = vmatmul.mubr.f32.vlgmr.msra.gmra.mrb[0].mxu1 %v120_v3  ;;  %592 = vmatmul.mubr.msk.f32.vlgmr.msra.gmra.mrb[0].mxu0 %vm46_vm0, %v714_v17 }
 0x115   :  { %v275_v18 = vpop.f32.mrb[0].mxu1  ;;  %v495_v19 = vpop.f32.mrb[0].mxu0 }
 0x116   :  { %v594_v20 = vadd.f32 %v495_v19, %v275_v18  ;;  %v578_v21 = vpop.f32.mrb[1].mxu1  ;;  %v593_v22 = vpop.f32.mrb[1].mxu0 }
 0x118   :  { %v502_v23 = vadd.f32 1e-09, %v594_v20  ;;  %500 = vst.msk [vmem:[#allocation7] sm:$0x1] %vm499_vm2, %v594_v20 }
 0x119   :  { %668 = shalt.err (!%p665_p6)
}
 0x11a   :  { %s669_s17 = scalar_lea.hbm %s809_s3, 16 }
 0x11b   :  { %p670_p7 = scmp.ne.s32.totalorder %s809_s3, %s669_s17  ;;  %p673_p8 = scmp.lt.u32.totalorder %s669_s17, %s809_s3 }
 0x11d   :  { %p675_p9 = pnand %p673_p8, %p670_p7 }
 0x11f   :  { %678 = shalt.err (!%p675_p9)
}
 0x120   :  { %528 = dma.vmem_to_hbm [thread:$0]  %s526_s12, 16, %s809_s3, [#allocation4]   ;;  %611 = vrsqrt.f32 %v502_v23  ;;  %vm505_vm3 = vcmp.eq.f32.partialorder %v502_v23, inf  ;;  %v508_v26 = vand.u32 2147483648, %v502_v23  ;;  %vm507_vm4 = vcmp.eq.f32.partialorder %v502_v23, 0.0 }
 0x121   :  { %v501_v28 = vld [vmem:[%s808_s2] sm:$0x1]  ;;  %s716_s26 = smov [#allocation8]  }
 0x122   :  { %v513_v31 = vsub.f32 1.0, %v501_v28  ;;  %v512_v34 = vmul.f32 %v594_v20, %v501_v28  ;;  %s535_s3 = sshll.u32 %s716_s26, 4  ;;  %s536_s3 = int_to_ptr.vmem [resolvable:$true] %s535_s3 }
 0x123   :  { %s679_s27 = scalar_lea.vmem %s536_s3, 16  ;;  %s683_s28 = scalar_lea.vmem %s536_s3, 32 }
 0x124   :  { %p680_p10 = scmp.ne.s32.totalorder %s536_s3, %s679_s27  ;;  %p684_p11 = scmp.lt.s32.totalorder %s536_s3, %s536_s3 }
 0x125   :  { %p685_p12 = scmp.lt.s32.totalorder %s683_s28, %s679_s27 }
 0x127   :  { %p686_p13 = por %p685_p12, %p684_p11 }
 0x129   :  { %p687_p0 = pnand %p686_p13, %p680_p10 }
 0x12a   :  { %v612_v24 = vpop.eup %611 }
 0x12b   :  { %v504_v25 = vmul.f32 %v612_v24, %v502_v23 }
 0x12d   :  { %v506_v27 = vsel %vm505_vm3, %v502_v23, %v504_v25 }
 0x12e   :  { %v509_v29 = vsel %vm507_vm4, %v508_v26, %v506_v27 }
 0x12f   :  { %v510_v30 = vsub.f32 1.0, %v509_v29 }
 0x131   :  { %v511_v32 = vmax.f32 %v510_v30, 0.0 }
 0x133   :  { %v514_v33 = vmul.f32 %v513_v31, %v511_v32 }
 0x135   :  { %v515_v35 = vmul.f32 %v514_v33, %v511_v32 }
 0x137   :  { %v516_v36 = vadd.f32 %v515_v35, %v512_v34 }
 0x139   :  { %v517_v37 = vmul.f32 0.5, %v516_v36 }
 0x13b   :  { %518 = vst.msk [vmem:[#allocation8] sm:$0x1] %vm499_vm2, %v517_v37 }
 0x13c   :  { %690 = shalt.err (!%p687_p0)
}
 0x13d   :  { %s691_s30 = scalar_lea.hbm %s810_s4, 16 }
 0x13e   :  { %p692_p1 = scmp.ne.s32.totalorder %s810_s4, %s691_s30  ;;  %p695_p2 = scmp.lt.u32.totalorder %s691_s30, %s810_s4 }
 0x140   :  { %p697_p3 = pnand %p695_p2, %p692_p1 }
 0x142   :  { %700 = shalt.err (!%p697_p3)
}
 0x143   :  { %538 = dma.vmem_to_hbm [thread:$0]  %s536_s3, 16, %s810_s4, [#allocation9]  }
 0x144   :  { %705 = dma.done.wait [#allocation4], 16  }
 0x145   :  { %706 = vsyncadd [#allocation4], 4294967280 }
 0x146   :  { %707 = dma.done.wait [#allocation9], 16  }
 0x147   :  { %708 = vsyncadd [#allocation9], 4294967280 }
 0x148   :  { %545 = vsyncpa [#allocation3], 1 }
 0x149   :  { %546 = vsyncpa [#allocation6], 1 }
 0x14a   :  { %547 = vsyncpa [#allocation4], 1 }
 0x14b   :  { %548 = vsyncpa [#allocation9], 1 }

</bundles_post_ra>
